<compile_context>
chip_gen: v7x
topology: tpu7x:2x2x1
jax: 0.10.0
libtpu: 0.0.40
codegen_flags: <defaults>
</compile_context>

<pallas_src>
import functools

import jax
import jax.numpy as jnp
from jax.experimental import pallas as pl
from jax.experimental.pallas import tpu as pltpu


def _round_up(n, m):
    return ((n + m - 1) // m) * m


def _pad_dim(n, lane=128):
    # 256-multiple padding fills the 256-wide MXU passes on v6e/v7x; small dims
    # (and v5e's 128-wide MXU) stay at 128-multiples to avoid padding waste.
    g = 256 if n >= 256 else lane
    return _round_up(n, g)


def _fc_kernel(*refs, L, apply_act, scales):
    """Fused MLP forward on one batch tile.

    refs = (x_tile (bf16), Wt_0..Wt_L (bf16, padded, transposed),
            B_0..B_L (f32 rows, padded), out_tile (f32))
    Per-layer scale is applied in the f32 epilogue (scales are static floats).
    """
    x_ref = refs[0]
    w_refs = refs[1:2 + L]            # L+1 transposed weights, each (in_p, out_p)
    b_refs = refs[2 + L:3 + 2 * L]    # L+1 biases, each (1, out_p)
    o_ref = refs[-1]

    h = x_ref[...]                    # bf16, straight off the DMA
    z = None
    for i in range(L + 1):
        # bf16 MXU inputs, f32 accumulation; scale + bias in the f32 epilogue.
        z = jnp.dot(h, w_refs[i][...], preferred_element_type=jnp.float32)
        z = z * scales[i] + b_refs[i][...]
        if apply_act and i < L:
            z = jnp.maximum(z, 0.0)   # act = ReLU
        if i < L:
            h = z.astype(jnp.bfloat16)
    o_ref[...] = z.astype(o_ref.dtype)


def fc_forward(x, Ws, Bs, *, act_is_relu=True, batch_tile=512, lane=128):
    """x: (batch, d). Ws[i]: (out_i, in_i) like torch. Bs[i]: (out_i,)."""
    x = jnp.asarray(x, jnp.float32)
    batch, d = x.shape
    L = len(Ws) - 1
    c = Ws[-1].shape[0]

    # Exact scales from the torch forward: 1/sqrt(d) for hidden layers (d =
    # ORIGINAL input dim), 1/batch for the last layer (global batch, not tile).
    # Applied in the kernel's f32 epilogue, not folded into bf16 weights.
    scales = tuple([1.0 / (d ** 0.5)] * L + [1.0 / batch])

    # Padded (lane-dense, MXU-friendly) feature dims.
    in_dims = [d] + [Ws[i].shape[0] for i in range(L)]
    out_dims = [Ws[i].shape[0] for i in range(L)] + [c]
    in_p = [_pad_dim(n, lane) for n in in_dims]
    out_p = [_pad_dim(n, lane) for n in out_dims]

    # Weight/bias prep: transpose, zero-pad, bf16 (scale NOT folded).
    # TODO(synk): optional int8 (v5e/v6e) / fp8 (v7x) weight path with per-layer
    # scales if NTK numerics tolerate it.
    Wts, Brow = [], []
    for i in range(L + 1):
        w = jnp.asarray(Ws[i], jnp.float32).T                      # (in_i, out_i)
        wp = jnp.zeros((in_p[i], out_p[i]), jnp.float32)
        wp = wp.at[:w.shape[0], :w.shape[1]].set(w)
        Wts.append(wp.astype(jnp.bfloat16))
        b = jnp.asarray(Bs[i], jnp.float32).reshape(1, -1)
        bp = jnp.zeros((1, out_p[i]), jnp.float32).at[:, :b.shape[1]].set(b)
        Brow.append(bp)                                            # zero-padded cols

    resident_w = sum(int(w.size) * 2 for w in Wts)                 # bf16 bytes
    resident_b = sum(int(b.size) * 4 for b in Brow)                # f32 bytes

    # Generation-aware VMEM budget.
    try:
        vmem_cap = int(pltpu.get_tpu_info().vmem_capacity_bytes)
    except Exception:
        vmem_cap = 64 << 20                                        # safe v7x floor
    vmem_hard_cap = max(int(0.8 * vmem_cap), 16 << 20)

    # Derive the batch tile TB from the budget left after resident weights:
    # per-row cost = dbl-buffered bf16 x + dbl-buffered f32 out + f32 layer
    # intermediates headroom.
    per_row = (2 * in_p[0] * 2
               + 2 * out_p[L] * 4
               + 3 * max(out_p) * 4)
    tb_budget_bytes = vmem_hard_cap - (resident_w + resident_b) - (4 << 20)
    tb_budget = max((tb_budget_bytes // per_row) // 8 * 8, 8)
    # TODO(synk): if resident weights alone exceed the budget (tb_budget pinned
    # at 8), switch to per-layer / K-tiled weight streaming (emit_pipeline or an
    # "arbitrary" grid axis with a VMEM accumulator) instead of residency.

    batch_rows = _round_up(batch, 8)                               # f32/bf16 sublane ok
    TB = max(8, min(_round_up(batch_tile, 8), batch_rows, int(tb_budget)))

    # Megacore: if the whole batch fits one tile, split into >=2 tiles so the
    # second TensorCore (v7x) has work -- but only when streaming the batch
    # dominates the extra weight fetch on the second core.
    if batch_rows > 8 and TB >= batch_rows:
        x_stream_bytes = batch_rows * in_p[0] * 2
        if x_stream_bytes >= resident_w:
            TB = max(8, _round_up((batch + 1) // 2, 8))

    batch_p = _round_up(batch, TB)

    # Streamed activations go in as bf16 (half the DMA / VMEM of f32).
    x_p = (jnp.zeros((batch_p, in_p[0]), jnp.bfloat16)
           .at[:batch, :d].set(x.astype(jnp.bfloat16)))

    kernel = functools.partial(_fc_kernel, L=L, apply_act=act_is_relu,
                               scales=scales)

    x_spec = pl.BlockSpec((TB, in_p[0]), lambda i: (i, 0))
    o_spec = pl.BlockSpec((TB, out_p[L]), lambda i: (i, 0))

    # Advisory cost estimate for XLA scheduling around the custom call.
    flops = 2 * batch_p * sum(in_p[i] * out_p[i] for i in range(L + 1))
    bytes_accessed = (int(x_p.size) * 2          # bf16 activations in
                      + resident_w + resident_b
                      + batch_p * out_p[L] * 4)  # f32 out

    def _call_variant(single_buffer_weights):
        if single_buffer_weights:
            # Grid-invariant operands: constant index_map, so double-buffering
            # them is pure VMEM waste -> request a single buffer.
            wkw = dict(pipeline_mode=pl.Buffered(1))
        else:
            wkw = {}
        w_specs = [pl.BlockSpec((in_p[i], out_p[i]), lambda g: (0, 0), **wkw)
                   for i in range(L + 1)]
        b_specs = [pl.BlockSpec((1, out_p[i]), lambda g: (0, 0), **wkw)
                   for i in range(L + 1)]
        wb_factor = 1 if single_buffer_weights else 2
        est = (2 * TB * in_p[0] * 2                 # bf16 x tile, double-buffered
               + 2 * TB * out_p[L] * 4              # f32 out tile, double-buffered
               + wb_factor * (resident_w + resident_b)
               + 3 * TB * max(out_p) * 4            # f32 layer intermediates
               + (2 << 20))                         # headroom
        vmem_limit = int(min(max(est, 16 << 20), vmem_hard_cap))
        return pl.pallas_call(
            kernel,
            out_shape=jax.ShapeDtypeStruct((batch_p, out_p[L]), jnp.float32),
            grid_spec=pltpu.PrefetchScalarGridSpec(
                num_scalar_prefetch=0,
                grid=(batch_p // TB,),
                in_specs=[x_spec] + w_specs + b_specs,
                out_specs=o_spec),
            compiler_params=pltpu.CompilerParams(
                dimension_semantics=("parallel",),
                vmem_limit_bytes=vmem_limit),
            cost_estimate=pl.CostEstimate(flops=flops, transcendentals=0,
                                          bytes_accessed=bytes_accessed),
        )(x_p, *Wts, *Brow)

    try:
        out = jax.block_until_ready(_call_variant(True))
    except Exception:
        # Fallback for JAX versions that reject pl.Buffered(1) on an input spec.
        out = jax.block_until_ready(_call_variant(False))

    out = out[:batch, :c]
    if c == 1:
        return out.reshape(-1)        # mirrors `x.view(-1)` branch
    return out


if __name__ == "__main__":
    # Small, deterministic setup consistent with FC(d, h, c, L, act=relu,
    # bias=True, last_bias=True, var_bias=1).
    batch, d, h, c, L = 8, 32, 64, 1, 2
    bias, last_bias, var_bias = True, True, 1.0

    key = jax.random.PRNGKey(0)
    keys = jax.random.split(key, 2 * (L + 1) + 1)

    x = jax.random.normal(keys[0], (batch, d), jnp.float32)

    Ws, Bs = [], []
    hh = d
    for i in range(L):
        Ws.append(jax.random.normal(keys[1 + i], (h, hh), jnp.float32))
        if bias:
            Bs.append(jax.random.normal(keys[1 + L + 1 + i], (h,), jnp.float32)
                      * (var_bias ** 0.5))
        else:
            Bs.append(jnp.zeros((h,), jnp.float32))   # B = 0 branch
        hh = h
    Ws.append(jax.random.normal(keys[1 + L], (c, hh), jnp.float32))
    if last_bias:
        Bs.append(jax.random.normal(keys[2 * (L + 1)], (c,), jnp.float32)
                  * (var_bias ** 0.5))
    else:
        Bs.append(jnp.zeros((c,), jnp.float32))

    out = jax.block_until_ready(fc_forward(x, Ws, Bs))

    # Reference 1: emulates the kernel's numerics exactly (bf16 weights and
    # activations at the matmul, f32 accumulation, scale+bias in f32 epilogue).
    ref_bf = x.astype(jnp.bfloat16)
    for i in range(L + 1):
        s = (1.0 / d ** 0.5) if i < L else (1.0 / batch)
        z = jnp.dot(ref_bf, Ws[i].T.astype(jnp.bfloat16),
                    preferred_element_type=jnp.float32) * s + Bs[i]
        if i < L:
            ref_bf = jnp.maximum(z, 0.0).astype(jnp.bfloat16)
        else:
            ref_bf = z
    if c == 1:
        ref_bf = ref_bf.reshape(-1)

    # Reference 2: pure-f32 mirror of the torch forward.
    ref = x
    for i in range(L + 1):
        if i < L:
            ref = jnp.maximum(ref @ (Ws[i].T / d ** 0.5) + Bs[i], 0.0)
        else:
            ref = ref @ (Ws[i].T / batch) + Bs[i]
    if c == 1:
        ref = ref.reshape(-1)

    assert out.shape == ref.shape, (out.shape, ref.shape)
    # Tight check vs the bf16-emulated reference (same numerics as the kernel).
    assert jnp.allclose(out, ref_bf, atol=2e-3, rtol=2e-3), \
        float(jnp.max(jnp.abs(out - ref_bf)))
    # Loose check vs the f32 torch-style reference (bf16 MXU inputs ->
    # tolerance necessarily looser than f32-only).
    assert jnp.allclose(out, ref, atol=2.5e-1, rtol=1e-1), \
        float(jnp.max(jnp.abs(out - ref)))
    print("KERNEL_OK")
</pallas_src>

<mosaic_0001>
module attributes {stable_mosaic.version = 11 : i64} {
  func.func @_fc_kernel(%arg0: i32, %arg1: memref<8x128xbf16, #tpu.memory_space<vmem>>, %arg2: memref<128x128xbf16, #tpu.memory_space<vmem>>, %arg3: memref<128x128xbf16, #tpu.memory_space<vmem>>, %arg4: memref<128x128xbf16, #tpu.memory_space<vmem>>, %arg5: memref<1x128xf32, #tpu.memory_space<vmem>>, %arg6: memref<1x128xf32, #tpu.memory_space<vmem>>, %arg7: memref<1x128xf32, #tpu.memory_space<vmem>>, %arg8: memref<8x128xf32, #tpu.memory_space<vmem>>) attributes {dimension_semantics = [#tpu.dimension_semantics<parallel>], iteration_bounds = array<i64: 1>, scalar_prefetch = 0 : i64, scratch_operands = 0 : i64, tpu.core_type = #tpu.core_type<tc>, window_params = [{transform_indices = @transform_0, window_bounds = array<i64: 8, 128>}, {pipeline_mode = #tpu.pipeline_mode<synchronous>, transform_indices = @transform_1, window_bounds = array<i64: 128, 128>}, {pipeline_mode = #tpu.pipeline_mode<synchronous>, transform_indices = @transform_2, window_bounds = array<i64: 128, 128>}, {pipeline_mode = #tpu.pipeline_mode<synchronous>, transform_indices = @transform_3, window_bounds = array<i64: 128, 128>}, {pipeline_mode = #tpu.pipeline_mode<synchronous>, transform_indices = @transform_4, window_bounds = array<i64: 1, 128>}, {pipeline_mode = #tpu.pipeline_mode<synchronous>, transform_indices = @transform_5, window_bounds = array<i64: 1, 128>}, {pipeline_mode = #tpu.pipeline_mode<synchronous>, transform_indices = @transform_6, window_bounds = array<i64: 1, 128>}, {transform_indices = @transform_7, window_bounds = array<i64: 8, 128>}]} {
    %c0 = arith.constant 0 : index
    %c0_0 = arith.constant 0 : index
    %0 = vector.load %arg1[%c0, %c0_0] : memref<8x128xbf16, #tpu.memory_space<vmem>>, vector<8x128xbf16>
    %c0_1 = arith.constant 0 : index
    %c0_2 = arith.constant 0 : index
    %1 = vector.load %arg2[%c0_1, %c0_2] : memref<128x128xbf16, #tpu.memory_space<vmem>>, vector<128x128xbf16>
    %cst = arith.constant dense<0.000000e+00> : vector<8x128xf32>
    %2 = tpu.matmul %0, %1, %cst {dimension_numbers = #tpu.dot_dimension_numbers<[1], [0], [0], [1], [0, 0, 1, 1], [], []>} : vector<8x128xbf16>, vector<128x128xbf16>, vector<8x128xf32> -> vector<8x128xf32>
    %cst_3 = arith.constant 0.176776692 : f32
    %3 = vector.broadcast %cst_3 : f32 to vector<8x128xf32>
    %4 = arith.mulf %2, %3 : vector<8x128xf32>
    %c0_4 = arith.constant 0 : index
    %c0_5 = arith.constant 0 : index
    %5 = vector.load %arg5[%c0_4, %c0_5] : memref<1x128xf32, #tpu.memory_space<vmem>>, vector<1x128xf32>
    %6 = vector.broadcast %5 : vector<1x128xf32> to vector<8x128xf32>
    %7 = arith.addf %4, %6 : vector<8x128xf32>
    %cst_6 = arith.constant 0.000000e+00 : f32
    %8 = vector.broadcast %cst_6 : f32 to vector<8x128xf32>
    %9 = arith.maximumf %7, %8 : vector<8x128xf32>
    %10 = arith.truncf %9 : vector<8x128xf32> to vector<8x128xbf16>
    %c0_7 = arith.constant 0 : index
    %c0_8 = arith.constant 0 : index
    %11 = vector.load %arg3[%c0_7, %c0_8] : memref<128x128xbf16, #tpu.memory_space<vmem>>, vector<128x128xbf16>
    %cst_9 = arith.constant dense<0.000000e+00> : vector<8x128xf32>
    %12 = tpu.matmul %10, %11, %cst_9 {dimension_numbers = #tpu.dot_dimension_numbers<[1], [0], [0], [1], [0, 0, 1, 1], [], []>} : vector<8x128xbf16>, vector<128x128xbf16>, vector<8x128xf32> -> vector<8x128xf32>
    %cst_10 = arith.constant 0.176776692 : f32
    %13 = vector.broadcast %cst_10 : f32 to vector<8x128xf32>
    %14 = arith.mulf %12, %13 : vector<8x128xf32>
    %c0_11 = arith.constant 0 : index
    %c0_12 = arith.constant 0 : index
    %15 = vector.load %arg6[%c0_11, %c0_12] : memref<1x128xf32, #tpu.memory_space<vmem>>, vector<1x128xf32>
    %16 = vector.broadcast %15 : vector<1x128xf32> to vector<8x128xf32>
    %17 = arith.addf %14, %16 : vector<8x128xf32>
    %cst_13 = arith.constant 0.000000e+00 : f32
    %18 = vector.broadcast %cst_13 : f32 to vector<8x128xf32>
    %19 = arith.maximumf %17, %18 : vector<8x128xf32>
    %20 = arith.truncf %19 : vector<8x128xf32> to vector<8x128xbf16>
    %c0_14 = arith.constant 0 : index
    %c0_15 = arith.constant 0 : index
    %21 = vector.load %arg4[%c0_14, %c0_15] : memref<128x128xbf16, #tpu.memory_space<vmem>>, vector<128x128xbf16>
    %cst_16 = arith.constant dense<0.000000e+00> : vector<8x128xf32>
    %22 = tpu.matmul %20, %21, %cst_16 {dimension_numbers = #tpu.dot_dimension_numbers<[1], [0], [0], [1], [0, 0, 1, 1], [], []>} : vector<8x128xbf16>, vector<128x128xbf16>, vector<8x128xf32> -> vector<8x128xf32>
    %cst_17 = arith.constant 1.250000e-01 : f32
    %23 = vector.broadcast %cst_17 : f32 to vector<8x128xf32>
    %24 = arith.mulf %22, %23 : vector<8x128xf32>
    %c0_18 = arith.constant 0 : index
    %c0_19 = arith.constant 0 : index
    %25 = vector.load %arg7[%c0_18, %c0_19] : memref<1x128xf32, #tpu.memory_space<vmem>>, vector<1x128xf32>
    %26 = vector.broadcast %25 : vector<1x128xf32> to vector<8x128xf32>
    %27 = arith.addf %24, %26 : vector<8x128xf32>
    %c0_20 = arith.constant 0 : index
    %c0_21 = arith.constant 0 : index
    %28 = vector.load %arg8[%c0_20, %c0_21] : memref<8x128xf32, #tpu.memory_space<vmem>>, vector<8x128xf32>
    tpu.vector_store %arg8[%c0_20, %c0_21], %27 {strides = array<i32>} : memref<8x128xf32, #tpu.memory_space<vmem>>, vector<8x128xf32>,
    return
  }
  func.func @transform_0(%arg0: i32) -> (i32, i32) {
    %c0_i32 = arith.constant 0 : i32
    %c0_i32_0 = arith.constant 0 : i32
    return %arg0, %c0_i32 : i32, i32
  }
  func.func @transform_1(%arg0: i32) -> (i32, i32) {
    %c0_i32 = arith.constant 0 : i32
    %c0_i32_0 = arith.constant 0 : i32
    %c0_i32_1 = arith.constant 0 : i32
    return %c0_i32, %c0_i32_0 : i32, i32
  }
  func.func @transform_2(%arg0: i32) -> (i32, i32) {
    %c0_i32 = arith.constant 0 : i32
    %c0_i32_0 = arith.constant 0 : i32
    %c0_i32_1 = arith.constant 0 : i32
    return %c0_i32, %c0_i32_0 : i32, i32
  }
  func.func @transform_3(%arg0: i32) -> (i32, i32) {
    %c0_i32 = arith.constant 0 : i32
    %c0_i32_0 = arith.constant 0 : i32
    %c0_i32_1 = arith.constant 0 : i32
    return %c0_i32, %c0_i32_0 : i32, i32
  }
  func.func @transform_4(%arg0: i32) -> (i32, i32) {
    %c0_i32 = arith.constant 0 : i32
    %c0_i32_0 = arith.constant 0 : i32
    %c0_i32_1 = arith.constant 0 : i32
    return %c0_i32, %c0_i32_0 : i32, i32
  }
  func.func @transform_5(%arg0: i32) -> (i32, i32) {
    %c0_i32 = arith.constant 0 : i32
    %c0_i32_0 = arith.constant 0 : i32
    %c0_i32_1 = arith.constant 0 : i32
    return %c0_i32, %c0_i32_0 : i32, i32
  }
  func.func @transform_6(%arg0: i32) -> (i32, i32) {
    %c0_i32 = arith.constant 0 : i32
    %c0_i32_0 = arith.constant 0 : i32
    %c0_i32_1 = arith.constant 0 : i32
    return %c0_i32, %c0_i32_0 : i32, i32
  }
  func.func @transform_7(%arg0: i32) -> (i32, i32) {
    %c0_i32 = arith.constant 0 : i32
    %c0_i32_0 = arith.constant 0 : i32
    return %arg0, %c0_i32 : i32, i32
  }
}

module attributes {stable_mosaic.version = 11 : i64} {
  func.func @_fc_kernel(%arg0: i32, %arg1: memref<8x128xbf16, #tpu.memory_space<vmem>>, %arg2: memref<128x128xbf16, #tpu.memory_space<vmem>>, %arg3: memref<128x128xbf16, #tpu.memory_space<vmem>>, %arg4: memref<128x128xbf16, #tpu.memory_space<vmem>>, %arg5: memref<1x128xf32, #tpu.memory_space<vmem>>, %arg6: memref<1x128xf32, #tpu.memory_space<vmem>>, %arg7: memref<1x128xf32, #tpu.memory_space<vmem>>, %arg8: memref<8x128xf32, #tpu.memory_space<vmem>>) attributes {dimension_semantics = [#tpu.dimension_semantics<parallel>], iteration_bounds = array<i64: 1>, scalar_prefetch = 0 : i64, scratch_operands = 0 : i64, tpu.core_type = #tpu.core_type<tc>, window_params = [{transform_indices = @transform_0, window_bounds = array<i64: 8, 128>}, {pipeline_mode = #tpu.pipeline_mode<synchronous>, transform_indices = @transform_1, window_bounds = array<i64: 128, 128>}, {pipeline_mode = #tpu.pipeline_mode<synchronous>, transform_indices = @transform_2, window_bounds = array<i64: 128, 128>}, {pipeline_mode = #tpu.pipeline_mode<synchronous>, transform_indices = @transform_3, window_bounds = array<i64: 128, 128>}, {pipeline_mode = #tpu.pipeline_mode<synchronous>, transform_indices = @transform_4, window_bounds = array<i64: 1, 128>}, {pipeline_mode = #tpu.pipeline_mode<synchronous>, transform_indices = @transform_5, window_bounds = array<i64: 1, 128>}, {pipeline_mode = #tpu.pipeline_mode<synchronous>, transform_indices = @transform_6, window_bounds = array<i64: 1, 128>}, {transform_indices = @transform_7, window_bounds = array<i64: 8, 128>}]} {
    %c0 = arith.constant 0 : index
    %c0_0 = arith.constant 0 : index
    %0 = vector.load %arg1[%c0, %c0_0] : memref<8x128xbf16, #tpu.memory_space<vmem>>, vector<8x128xbf16>
    %c0_1 = arith.constant 0 : index
    %c0_2 = arith.constant 0 : index
    %1 = vector.load %arg2[%c0_1, %c0_2] : memref<128x128xbf16, #tpu.memory_space<vmem>>, vector<128x128xbf16>
    %cst = arith.constant dense<0.000000e+00> : vector<8x128xf32>
    %2 = tpu.matmul %0, %1, %cst {dimension_numbers = #tpu.dot_dimension_numbers<[1], [0], [0], [1], [0, 0, 1, 1], [], []>} : vector<8x128xbf16>, vector<128x128xbf16>, vector<8x128xf32> -> vector<8x128xf32>
    %cst_3 = arith.constant 0.176776692 : f32
    %3 = vector.broadcast %cst_3 : f32 to vector<8x128xf32>
    %4 = arith.mulf %2, %3 : vector<8x128xf32>
    %c0_4 = arith.constant 0 : index
    %c0_5 = arith.constant 0 : index
    %5 = vector.load %arg5[%c0_4, %c0_5] : memref<1x128xf32, #tpu.memory_space<vmem>>, vector<1x128xf32>
    %6 = vector.broadcast %5 : vector<1x128xf32> to vector<8x128xf32>
    %7 = arith.addf %4, %6 : vector<8x128xf32>
    %cst_6 = arith.constant 0.000000e+00 : f32
    %8 = vector.broadcast %cst_6 : f32 to vector<8x128xf32>
    %9 = arith.maximumf %7, %8 : vector<8x128xf32>
    %10 = arith.truncf %9 : vector<8x128xf32> to vector<8x128xbf16>
    %c0_7 = arith.constant 0 : index
    %c0_8 = arith.constant 0 : index
    %11 = vector.load %arg3[%c0_7, %c0_8] : memref<128x128xbf16, #tpu.memory_space<vmem>>, vector<128x128xbf16>
    %cst_9 = arith.constant dense<0.000000e+00> : vector<8x128xf32>
    %12 = tpu.matmul %10, %11, %cst_9 {dimension_numbers = #tpu.dot_dimension_numbers<[1], [0], [0], [1], [0, 0, 1, 1], [], []>} : vector<8x128xbf16>, vector<128x128xbf16>, vector<8x128xf32> -> vector<8x128xf32>
    %cst_10 = arith.constant 0.176776692 : f32
    %13 = vector.broadcast %cst_10 : f32 to vector<8x128xf32>
    %14 = arith.mulf %12, %13 : vector<8x128xf32>
    %c0_11 = arith.constant 0 : index
    %c0_12 = arith.constant 0 : index
    %15 = vector.load %arg6[%c0_11, %c0_12] : memref<1x128xf32, #tpu.memory_space<vmem>>, vector<1x128xf32>
    %16 = vector.broadcast %15 : vector<1x128xf32> to vector<8x128xf32>
    %17 = arith.addf %14, %16 : vector<8x128xf32>
    %cst_13 = arith.constant 0.000000e+00 : f32
    %18 = vector.broadcast %cst_13 : f32 to vector<8x128xf32>
    %19 = arith.maximumf %17, %18 : vector<8x128xf32>
    %20 = arith.truncf %19 : vector<8x128xf32> to vector<8x128xbf16>
    %c0_14 = arith.constant 0 : index
    %c0_15 = arith.constant 0 : index
    %21 = vector.load %arg4[%c0_14, %c0_15] : memref<128x128xbf16, #tpu.memory_space<vmem>>, vector<128x128xbf16>
    %cst_16 = arith.constant dense<0.000000e+00> : vector<8x128xf32>
    %22 = tpu.matmul %20, %21, %cst_16 {dimension_numbers = #tpu.dot_dimension_numbers<[1], [0], [0], [1], [0, 0, 1, 1], [], []>} : vector<8x128xbf16>, vector<128x128xbf16>, vector<8x128xf32> -> vector<8x128xf32>
    %cst_17 = arith.constant 1.250000e-01 : f32
    %23 = vector.broadcast %cst_17 : f32 to vector<8x128xf32>
    %24 = arith.mulf %22, %23 : vector<8x128xf32>
    %c0_18 = arith.constant 0 : index
    %c0_19 = arith.constant 0 : index
    %25 = vector.load %arg7[%c0_18, %c0_19] : memref<1x128xf32, #tpu.memory_space<vmem>>, vector<1x128xf32>
    %26 = vector.broadcast %25 : vector<1x128xf32> to vector<8x128xf32>
    %27 = arith.addf %24, %26 : vector<8x128xf32>
    %c0_20 = arith.constant 0 : index
    %c0_21 = arith.constant 0 : index
    %28 = vector.load %arg8[%c0_20, %c0_21] : memref<8x128xf32, #tpu.memory_space<vmem>>, vector<8x128xf32>
    tpu.vector_store %arg8[%c0_20, %c0_21], %27 {strides = array<i32>} : memref<8x128xf32, #tpu.memory_space<vmem>>, vector<8x128xf32>,
    return
  }
  func.func @transform_0(%arg0: i32) -> (i32, i32) {
    %c0_i32 = arith.constant 0 : i32
    %c0_i32_0 = arith.constant 0 : i32
    return %arg0, %c0_i32 : i32, i32
  }
  func.func @transform_1(%arg0: i32) -> (i32, i32) {
    %c0_i32 = arith.constant 0 : i32
    %c0_i32_0 = arith.constant 0 : i32
    %c0_i32_1 = arith.constant 0 : i32
    return %c0_i32, %c0_i32_0 : i32, i32
  }
  func.func @transform_2(%arg0: i32) -> (i32, i32) {
    %c0_i32 = arith.constant 0 : i32
    %c0_i32_0 = arith.constant 0 : i32
    %c0_i32_1 = arith.constant 0 : i32
    return %c0_i32, %c0_i32_0 : i32, i32
  }
  func.func @transform_3(%arg0: i32) -> (i32, i32) {
    %c0_i32 = arith.constant 0 : i32
    %c0_i32_0 = arith.constant 0 : i32
    %c0_i32_1 = arith.constant 0 : i32
    return %c0_i32, %c0_i32_0 : i32, i32
  }
  func.func @transform_4(%arg0: i32) -> (i32, i32) {
    %c0_i32 = arith.constant 0 : i32
    %c0_i32_0 = arith.constant 0 : i32
    %c0_i32_1 = arith.constant 0 : i32
    return %c0_i32, %c0_i32_0 : i32, i32
  }
  func.func @transform_5(%arg0: i32) -> (i32, i32) {
    %c0_i32 = arith.constant 0 : i32
    %c0_i32_0 = arith.constant 0 : i32
    %c0_i32_1 = arith.constant 0 : i32
    return %c0_i32, %c0_i32_0 : i32, i32
  }
  func.func @transform_6(%arg0: i32) -> (i32, i32) {
    %c0_i32 = arith.constant 0 : i32
    %c0_i32_0 = arith.constant 0 : i32
    %c0_i32_1 = arith.constant 0 : i32
    return %c0_i32, %c0_i32_0 : i32, i32
  }
  func.func @transform_7(%arg0: i32) -> (i32, i32) {
    %c0_i32 = arith.constant 0 : i32
    %c0_i32_0 = arith.constant 0 : i32
    return %arg0, %c0_i32 : i32, i32
  }
}

</mosaic_0001>

<bundles_post_ra>
// kernel: tpu_custom_call.1
= control target key start
LH: loop header
LB: loop body
LE: loop exit
PB: predicated region body
PF: predicated region fallthrough
CT: control target
= control target key end

     0   :  { %12 = vsyncpa [#allocation3], 0  ;;  %s865_s0 = inlined_call_operand.hbm [shape: bf16[8,128], index: 0, kind: input, shape index: {}]   ;;  %s866_s1 = inlined_call_operand.hbm [shape: bf16[128,128], index: 1, kind: input, shape index: {}]   ;;  %s867_s2 = inlined_call_operand.hbm [shape: bf16[128,128], index: 2, kind: input, shape index: {}]   ;;  %s868_s3 = inlined_call_operand.hbm [shape: bf16[128,128], index: 3, kind: input, shape index: {}]   ;;  %s869_s4 = inlined_call_operand.vmem [shape: f32[1,128], index: 4, kind: input, shape index: {}]   ;;  %s870_s5 = inlined_call_operand.vmem [shape: f32[1,128], index: 5, kind: input, shape index: {}]   ;;  %s871_s6 = inlined_call_operand.vmem [shape: f32[1,128], index: 6, kind: input, shape index: {}]   ;;  %s872_s7 = inlined_call_operand.hbm [shape: f32[8,128], index: 7, kind: output, shape index: {}]  }
   0x1   :  { %13 = vsyncpa [#allocation6], 0 }
   0x2   :  { %14 = vsyncpa [#allocation9], 0 }
   0x3   :  { %15 = vsyncpa [#allocation4], 0  ;;  %s708_s24 = smov [#allocation5]   ;;  %s590_s28 = scalar_lea.hbm %s866_s1, 1024 }
   0x4   :  { %s31_s25 = sshll.u32 %s708_s24, 4  ;;  %p591_p0 = scmp.ne.s32.totalorder %s866_s1, %s590_s28  ;;  %s32_s25 = int_to_ptr.vmem [resolvable:$true] %s31_s25 }
   0x5   :  { %p594_p1 = scmp.lt.u32.totalorder %s590_s28, %s866_s1 }
   0x7   :  { %p596_p2 = pnand %p594_p1, %p591_p0 }
   0x9   :  { %599 = shalt.err (!%p596_p2)
}
   0xa   :  { %s600_s10 = scalar_lea.vmem %s32_s25, 1024  ;;  %p605_p4 = scmp.lt.s32.totalorder %s32_s25, %s32_s25 }
   0xb   :  { %p601_p3 = scmp.ne.s32.totalorder %s32_s25, %s600_s10  ;;  %p606_p5 = scmp.lt.s32.totalorder %s600_s10, %s600_s10 }
   0xd   :  { %p607_p6 = por %p606_p5, %p605_p4 }
   0xf   :  { %p608_p7 = pnand %p607_p6, %p601_p3 }
  0x11   :  { %611 = shalt.err (!%p608_p7)
}
  0x12   :  { %s709_s11 = smov 64   ;;  %s710_s12 = smov 4  }
  0x13   :  { %37 = dma.hbm_to_vmem [thread:$0]  %s866_s1, 1024, %s32_s25, [#allocation6], %s709_s11, %s709_s11, %s710_s12  }
  0x14   :  { %s711_s15 = smov [#allocation2]   ;;  %s712_s17 = smov [#allocation7]  }
  0x15   :  { %s22_s16 = sshll.u32 %s711_s15, 4  ;;  %s43_s18 = sshll.u32 %s712_s17, 4  ;;  %s23_s16 = int_to_ptr.vmem [resolvable:$true] %s22_s16  ;;  %s44_s18 = int_to_ptr.vmem [resolvable:$true] %s43_s18 }
  0x16   :  { %s612_s21 = scalar_lea.hbm %s865_s0, 64 }
  0x17   :  { %p613_p8 = scmp.ne.s32.totalorder %s865_s0, %s612_s21  ;;  %p616_p9 = scmp.lt.u32.totalorder %s612_s21, %s865_s0 }
  0x19   :  { %p618_p10 = pnand %p616_p9, %p613_p8 }
  0x1b   :  { %621 = shalt.err (!%p618_p10)
}
  0x1c   :  { %s622_s1 = scalar_lea.vmem %s23_s16, 64  ;;  %p627_p12 = scmp.lt.s32.totalorder %s23_s16, %s23_s16 }
  0x1d   :  { %p623_p11 = scmp.ne.s32.totalorder %s23_s16, %s622_s1  ;;  %p628_p13 = scmp.lt.s32.totalorder %s622_s1, %s622_s1 }
  0x1f   :  { %p629_p0 = por %p628_p13, %p627_p12 }
  0x21   :  { %p630_p1 = pnand %p629_p0, %p623_p11 }
  0x23   :  { %633 = shalt.err (!%p630_p1)
}
  0x24   :  { %25 = dma.hbm_to_vmem [thread:$0]  %s865_s0, 64, %s23_s16, [#allocation3]  }
  0x25   :  { %s634_s30 = scalar_lea.hbm %s867_s2, 1024 }
  0x26   :  { %p635_p2 = scmp.ne.s32.totalorder %s867_s2, %s634_s30  ;;  %p638_p3 = scmp.lt.u32.totalorder %s634_s30, %s867_s2 }
  0x28   :  { %p640_p4 = pnand %p638_p3, %p635_p2 }
  0x2a   :  { %643 = shalt.err (!%p640_p4)
}
  0x2b   :  { %s644_s14 = scalar_lea.vmem %s44_s18, 1024  ;;  %p649_p6 = scmp.lt.s32.totalorder %s44_s18, %s44_s18 }
  0x2c   :  { %p645_p5 = scmp.ne.s32.totalorder %s44_s18, %s644_s14  ;;  %p650_p7 = scmp.lt.s32.totalorder %s644_s14, %s644_s14 }
  0x2e   :  { %p651_p8 = por %p650_p7, %p649_p6 }
  0x30   :  { %p652_p9 = pnand %p651_p8, %p645_p5 }
  0x32   :  { %655 = shalt.err (!%p652_p9)
}
  0x33   :  { %49 = dma.hbm_to_vmem [thread:$0]  %s867_s2, 1024, %s44_s18, [#allocation6], %s709_s11, %s709_s11, %s710_s12  }
  0x34   :  { %s713_s16 = smov [#allocation8]   ;;  %s656_s21 = scalar_lea.hbm %s868_s3, 1024 }
  0x35   :  { %s55_s17 = sshll.u32 %s713_s16, 4  ;;  %p657_p10 = scmp.ne.s32.totalorder %s868_s3, %s656_s21  ;;  %s56_s17 = int_to_ptr.vmem [resolvable:$true] %s55_s17 }
  0x36   :  { %p660_p11 = scmp.lt.u32.totalorder %s656_s21, %s868_s3 }
  0x38   :  { %p662_p12 = pnand %p660_p11, %p657_p10 }
  0x3a   :  { %665 = shalt.err (!%p662_p12)
}
  0x3b   :  { %s666_s1 = scalar_lea.vmem %s56_s17, 1024  ;;  %p671_p0 = scmp.lt.s32.totalorder %s56_s17, %s56_s17 }
  0x3c   :  { %p667_p13 = scmp.ne.s32.totalorder %s56_s17, %s666_s1  ;;  %p672_p1 = scmp.lt.s32.totalorder %s666_s1, %s666_s1 }
  0x3e   :  { %p673_p2 = por %p672_p1, %p671_p0 }
  0x40   :  { %p674_p3 = pnand %p673_p2, %p667_p13 }
  0x42   :  { %677 = shalt.err (!%p674_p3)
}
  0x43   :  { %61 = dma.hbm_to_vmem [thread:$0]  %s868_s3, 1024, %s56_s17, [#allocation9], %s709_s11, %s709_s11, %s710_s12  }
  0x44   :  { %700 = dma.done.wait [#allocation3], 64  }
  0x45   :  { %701 = vsyncadd [#allocation3], 4294967232 }
  0x46   :  { %702 = dma.done.wait [#allocation6], 2048  }
  0x47   :  { %703 = vsyncadd [#allocation6], 4294965248 }
  0x48   :  { %704 = dma.done.wait [#allocation9], 1024  }
  0x49   :  { %705 = vsyncadd [#allocation9], 4294966272  ;;  %v714_v0 = vmov 0.0   ;;  %vm715_vm0 = vmmov 0   ;;  %v566_v1 = vld [vmem:[#allocation5] sm:$0xff]   ;;  %v567_v2 = vld [vmem:[#allocation5 + $0x8] sm:$0xff]  }
  0x4a   :  { %497 = vmatprep.subr.bf16.mxu0 %v714_v0  ;;  %513 = vmatprep.mubr.msk.bf16.mxu0 %vm715_vm0, %v714_v0  ;;  %v568_v3 = vld [vmem:[#allocation5 + $0x10] sm:$0xff]   ;;  %v574_v4 = vld [vmem:[#allocation7] sm:$0xff]   ;;  %v569_v5 = vld [vmem:[#allocation5 + $0x18] sm:$0xff]   ;;  %s716_s28 = smov [#allocation10]  }
  0x4b   :  { %517 = vmatprep.subr.bf16.mxu1 %v714_v0  ;;  %533 = vmatprep.mubr.msk.bf16.mxu1 %vm715_vm0, %v714_v0  ;;  %v575_v6 = vld [vmem:[#allocation7 + $0x8] sm:$0xff]   ;;  %v570_v7 = vld [vmem:[#allocation5 + $0x20] sm:$0xff]   ;;  %v576_v8 = vld [vmem:[#allocation7 + $0x10] sm:$0xff]   ;;  %s432_s29 = sshll.u32 %s716_s28, 4  ;;  %s433_s29 = int_to_ptr.vmem [resolvable:$true] %s432_s29 }
  0x4c   :  { %498 = vmatpush3.bf16.msra.mxu0 %v566_v1  ;;  %518 = vmatpush3.bf16.msra.mxu1 %v574_v4  ;;  %v571_v9 = vld [vmem:[#allocation5 + $0x28] sm:$0xff]   ;;  %v577_v10 = vld [vmem:[#allocation7 + $0x18] sm:$0xff]   ;;  %v572_v11 = vld [vmem:[#allocation5 + $0x30] sm:$0xff]   ;;  %p683_p5 = scmp.lt.s32.totalorder %s433_s29, %s433_s29 }
  0x4d   :  { %499 = vmatprep.subr.bf16.mxu0 %v714_v0  ;;  %519 = vmatprep.subr.bf16.mxu1 %v714_v0  ;;  %v578_v12 = vld [vmem:[#allocation7 + $0x20] sm:$0xff]   ;;  %v573_v13 = vld [vmem:[#allocation5 + $0x38] sm:$0xff]   ;;  %v579_v14 = vld [vmem:[#allocation7 + $0x28] sm:$0xff]  }
  0x4e   :  { %v81_v15 = vld [vmem:[#allocation2] sm:$0xf]  ;;  %v580_v16 = vld [vmem:[#allocation7 + $0x30] sm:$0xff]   ;;  %v582_v18 = vld [vmem:[#allocation8] sm:$0xff]  }
  0x4f   :  { %v581_v17 = vld [vmem:[#allocation7 + $0x38] sm:$0xff]   ;;  %v583_v19 = vld [vmem:[#allocation8 + $0x8] sm:$0xff]   ;;  %v584_v20 = vld [vmem:[#allocation8 + $0x10] sm:$0xff]  }
  0x50   :  { %500 = vmatpush3.bf16.msra.mxu0 %v567_v2  ;;  %520 = vmatpush3.bf16.msra.mxu1 %v575_v6  ;;  %v585_v21 = vld [vmem:[#allocation8 + $0x18] sm:$0xff]   ;;  %v586_v22 = vld [vmem:[#allocation8 + $0x20] sm:$0xff]   ;;  %v587_v23 = vld [vmem:[#allocation8 + $0x28] sm:$0xff]  }
  0x51   :  { %501 = vmatprep.subr.bf16.mxu0 %v714_v0  ;;  %521 = vmatprep.subr.bf16.mxu1 %v714_v0  ;;  %v451_v25 = vld [vmem:[%s869_s4] ss:$0 sm:$0xff]  ;;  %v588_v33 = vld [vmem:[#allocation8 + $0x30] sm:$0xff]  }
  0x52   :  { %v589_v34 = vld [vmem:[#allocation8 + $0x38] sm:$0xff]  }
  0x53   :  { %v460_v36 = vld [vmem:[%s870_s5] ss:$0 sm:$0xff]  ;;  %s678_s5 = scalar_lea.vmem %s433_s29, 128 }
  0x54   :  { %502 = vmatpush3.bf16.msra.mxu0 %v568_v3  ;;  %522 = vmatpush3.bf16.msra.mxu1 %v576_v8  ;;  %v469_v45 = vld [vmem:[%s871_s6] ss:$0 sm:$0xff]  ;;  %p679_p4 = scmp.ne.s32.totalorder %s433_s29, %s678_s5  ;;  %p684_p6 = scmp.lt.s32.totalorder %s678_s5, %s678_s5 }
  0x55   :  { %503 = vmatprep.subr.bf16.mxu0 %v714_v0  ;;  %523 = vmatprep.subr.bf16.mxu1 %v714_v0 }
  0x56   :  { %p685_p7 = por %p684_p6, %p683_p5 }
  0x58   :  { %504 = vmatpush3.bf16.msra.mxu0 %v569_v5  ;;  %524 = vmatpush3.bf16.msra.mxu1 %v577_v10  ;;  %p686_p8 = pnand %p685_p7, %p679_p4 }
  0x59   :  { %505 = vmatprep.subr.bf16.mxu0 %v714_v0  ;;  %525 = vmatprep.subr.bf16.mxu1 %v714_v0 }
  0x5c   :  { %506 = vmatpush3.bf16.msra.mxu0 %v570_v7  ;;  %526 = vmatpush3.bf16.msra.mxu1 %v578_v12 }
  0x5d   :  { %507 = vmatprep.subr.bf16.mxu0 %v714_v0  ;;  %527 = vmatprep.subr.bf16.mxu1 %v714_v0 }
  0x60   :  { %508 = vmatpush3.bf16.msra.mxu0 %v571_v9  ;;  %528 = vmatpush3.bf16.msra.mxu1 %v579_v14 }
  0x61   :  { %509 = vmatprep.subr.bf16.mxu0 %v714_v0  ;;  %529 = vmatprep.subr.bf16.mxu1 %v714_v0 }
  0x64   :  { %510 = vmatpush3.bf16.msra.mxu0 %v572_v11  ;;  %530 = vmatpush3.bf16.msra.mxu1 %v580_v16 }
  0x65   :  { %511 = vmatprep.subr.bf16.mxu0 %v714_v0  ;;  %531 = vmatprep.subr.bf16.mxu1 %v714_v0 }
  0x68   :  { %512 = vmatpush3.bf16.msra.mxu0 %v573_v13  ;;  %532 = vmatpush3.bf16.msra.mxu1 %v581_v17 }
  0x69   :  { %537 = vmatprep.subr.bf16.mxu0 %v714_v0 }
  0x6b   :  { %514 = vmatmul.mubr.bf16.vlgmr.msra.gmra.mrb[0].mxu0 %v81_v15 }
  0x6c   :  { %553 = vmatprep.mubr.msk.bf16.mxu0 %vm715_vm0, %v714_v0  ;;  %538 = vmatpush3.bf16.msra.mxu0 %v582_v18 }
  0x6d   :  { %539 = vmatprep.subr.bf16.mxu0 %v714_v0 }
  0x70   :  { %540 = vmatpush3.bf16.msra.mxu0 %v583_v19 }
  0x71   :  { %541 = vmatprep.subr.bf16.mxu0 %v714_v0 }
  0x74   :  { %542 = vmatpush3.bf16.msra.mxu0 %v584_v20 }
  0x75   :  { %543 = vmatprep.subr.bf16.mxu0 %v714_v0 }
  0x78   :  { %544 = vmatpush3.bf16.msra.mxu0 %v585_v21 }
  0x79   :  { %545 = vmatprep.subr.bf16.mxu0 %v714_v0 }
  0x7c   :  { %546 = vmatpush3.bf16.msra.mxu0 %v586_v22 }
  0x7d   :  { %547 = vmatprep.subr.bf16.mxu0 %v714_v0 }
  0x80   :  { %548 = vmatpush3.bf16.msra.mxu0 %v587_v23 }
  0x81   :  { %549 = vmatprep.subr.bf16.mxu0 %v714_v0 }
  0x84   :  { %550 = vmatpush3.bf16.msra.mxu0 %v588_v33 }
  0x85   :  { %551 = vmatprep.subr.bf16.mxu0 %v714_v0 }
  0x88   :  { %552 = vmatpush3.bf16.msra.mxu0 %v589_v34 }
 0x13e   :  { %v180_v24 = vpop.f32.mrb[0].mxu0 }
 0x13f   :  { %v186_v26 = vmul.f32 0.17677669, %v180_v24  ;;  %v515_v27 = vpop.f32.mrb[1].mxu0 }
 0x140   :  { %v183_v28 = vpop.f32.mrb[2].mxu0 }
 0x141   :  { %v194_v29 = vadd.f32 %v451_v25, %v186_v26  ;;  %v516_v30 = vpop.f32.mrb[3].mxu0 }
 0x143   :  { %v195_v31 = vmax.f32 %v194_v29, 0.0 }
 0x145   :  { %v196_v32 = vpack.c.bf16 %v195_v31, %v195_v31 }
 0x147   :  { %534 = vmatmul.mubr.bf16.vlgmr.msra.gmra.mrb[0].mxu1 %v196_v32 }
 0x21a   :  { %v295_v35 = vpop.f32.mrb[0].mxu1 }
 0x21b   :  { %v301_v37 = vmul.f32 0.17677669, %v295_v35  ;;  %v535_v38 = vpop.f32.mrb[1].mxu1 }
 0x21c   :  { %v298_v39 = vpop.f32.mrb[2].mxu1 }
 0x21d   :  { %v309_v40 = vadd.f32 %v460_v36, %v301_v37  ;;  %v536_v41 = vpop.f32.mrb[3].mxu1 }
 0x21f   :  { %v310_v42 = vmax.f32 %v309_v40, 0.0 }
 0x221   :  { %v311_v43 = vpack.c.bf16 %v310_v42, %v310_v42 }
 0x223   :  { %554 = vmatmul.mubr.bf16.vlgmr.msra.gmra.mrb[4].mxu0 %v311_v43 }
 0x2f6   :  { %v410_v44 = vpop.f32.mrb[4].mxu0 }
 0x2f7   :  { %v416_v46 = vmul.f32 0.125, %v410_v44  ;;  %v555_v47 = vpop.f32.mrb[5].mxu0 }
 0x2f8   :  { %v413_v48 = vpop.f32.mrb[6].mxu0 }
 0x2f9   :  { %v424_v49 = vadd.f32 %v469_v45, %v416_v46  ;;  %v556_v50 = vpop.f32.mrb[7].mxu0 }
 0x2fb   :  { %425 = vst [vmem:[#allocation10] sm:$0xff] %v424_v49 }
 0x2fc   :  { %689 = shalt.err (!%p686_p8)
}
 0x2fd   :  { %s690_s6 = scalar_lea.hbm %s872_s7, 128 }
 0x2fe   :  { %p691_p9 = scmp.ne.s32.totalorder %s872_s7, %s690_s6  ;;  %p694_p10 = scmp.lt.u32.totalorder %s690_s6, %s872_s7 }
 0x300   :  { %p696_p11 = pnand %p694_p10, %p691_p9 }
 0x302   :  { %699 = shalt.err (!%p696_p11)
}
 0x303   :  { %435 = dma.vmem_to_hbm [thread:$0]  %s433_s29, 128, %s872_s7, [#allocation4]  }
 0x304   :  { %706 = dma.done.wait [#allocation4], 128  }
 0x305   :  { %707 = vsyncadd [#allocation4], 4294967168 }
 0x306   :  { %439 = vsyncpa [#allocation3], 1 }
 0x307   :  { %440 = vsyncpa [#allocation6], 1 }
 0x308   :  { %441 = vsyncpa [#allocation9], 1 }
 0x309   :  { %442 = vsyncpa [#allocation4], 1 }

// kernel: tpu_custom_call.1
= control target key start
LH: loop header
LB: loop body
LE: loop exit
PB: predicated region body
PF: predicated region fallthrough
CT: control target
= control target key end

     0   :  { %12 = vsyncpa [#allocation3], 0  ;;  %s865_s0 = inlined_call_operand.hbm [shape: bf16[8,128], index: 0, kind: input, shape index: {}]   ;;  %s866_s1 = inlined_call_operand.hbm [shape: bf16[128,128], index: 1, kind: input, shape index: {}]   ;;  %s867_s2 = inlined_call_operand.hbm [shape: bf16[128,128], index: 2, kind: input, shape index: {}]   ;;  %s868_s3 = inlined_call_operand.hbm [shape: bf16[128,128], index: 3, kind: input, shape index: {}]   ;;  %s869_s4 = inlined_call_operand.vmem [shape: f32[1,128], index: 4, kind: input, shape index: {}]   ;;  %s870_s5 = inlined_call_operand.vmem [shape: f32[1,128], index: 5, kind: input, shape index: {}]   ;;  %s871_s6 = inlined_call_operand.vmem [shape: f32[1,128], index: 6, kind: input, shape index: {}]   ;;  %s872_s7 = inlined_call_operand.hbm [shape: f32[8,128], index: 7, kind: output, shape index: {}]  }
   0x1   :  { %13 = vsyncpa [#allocation6], 0 }
   0x2   :  { %14 = vsyncpa [#allocation9], 0 }
   0x3   :  { %15 = vsyncpa [#allocation4], 0  ;;  %s708_s24 = smov [#allocation5]   ;;  %s590_s28 = scalar_lea.hbm %s866_s1, 1024 }
   0x4   :  { %s31_s25 = sshll.u32 %s708_s24, 4  ;;  %p591_p0 = scmp.ne.s32.totalorder %s866_s1, %s590_s28  ;;  %s32_s25 = int_to_ptr.vmem [resolvable:$true] %s31_s25 }
   0x5   :  { %p594_p1 = scmp.lt.u32.totalorder %s590_s28, %s866_s1 }
   0x7   :  { %p596_p2 = pnand %p594_p1, %p591_p0 }
   0x9   :  { %599 = shalt.err (!%p596_p2)
}
   0xa   :  { %s600_s10 = scalar_lea.vmem %s32_s25, 1024  ;;  %p605_p4 = scmp.lt.s32.totalorder %s32_s25, %s32_s25 }
   0xb   :  { %p601_p3 = scmp.ne.s32.totalorder %s32_s25, %s600_s10  ;;  %p606_p5 = scmp.lt.s32.totalorder %s600_s10, %s600_s10 }
   0xd   :  { %p607_p6 = por %p606_p5, %p605_p4 }
   0xf   :  { %p608_p7 = pnand %p607_p6, %p601_p3 }
  0x11   :  { %611 = shalt.err (!%p608_p7)
}
  0x12   :  { %s709_s11 = smov 64   ;;  %s710_s12 = smov 4  }
  0x13   :  { %37 = dma.hbm_to_vmem [thread:$0]  %s866_s1, 1024, %s32_s25, [#allocation6], %s709_s11, %s709_s11, %s710_s12  }
  0x14   :  { %s711_s15 = smov [#allocation2]   ;;  %s712_s17 = smov [#allocation7]  }
  0x15   :  { %s22_s16 = sshll.u32 %s711_s15, 4  ;;  %s43_s18 = sshll.u32 %s712_s17, 4  ;;  %s23_s16 = int_to_ptr.vmem [resolvable:$true] %s22_s16  ;;  %s44_s18 = int_to_ptr.vmem [resolvable:$true] %s43_s18 }
  0x16   :  { %s612_s21 = scalar_lea.hbm %s865_s0, 64 }
  0x17   :  { %p613_p8 = scmp.ne.s32.totalorder %s865_s0, %s612_s21  ;;  %p616_p9 = scmp.lt.u32.totalorder %s612_s21, %s865_s0 }
  0x19   :  { %p618_p10 = pnand %p616_p9, %p613_p8 }
  0x1b   :  { %621 = shalt.err (!%p618_p10)
}
  0x1c   :  { %s622_s1 = scalar_lea.vmem %s23_s16, 64  ;;  %p627_p12 = scmp.lt.s32.totalorder %s23_s16, %s23_s16 }
  0x1d   :  { %p623_p11 = scmp.ne.s32.totalorder %s23_s16, %s622_s1  ;;  %p628_p13 = scmp.lt.s32.totalorder %s622_s1, %s622_s1 }
  0x1f   :  { %p629_p0 = por %p628_p13, %p627_p12 }
  0x21   :  { %p630_p1 = pnand %p629_p0, %p623_p11 }
  0x23   :  { %633 = shalt.err (!%p630_p1)
}
  0x24   :  { %25 = dma.hbm_to_vmem [thread:$0]  %s865_s0, 64, %s23_s16, [#allocation3]  }
  0x25   :  { %s634_s30 = scalar_lea.hbm %s867_s2, 1024 }
  0x26   :  { %p635_p2 = scmp.ne.s32.totalorder %s867_s2, %s634_s30  ;;  %p638_p3 = scmp.lt.u32.totalorder %s634_s30, %s867_s2 }
  0x28   :  { %p640_p4 = pnand %p638_p3, %p635_p2 }
  0x2a   :  { %643 = shalt.err (!%p640_p4)
}
  0x2b   :  { %s644_s14 = scalar_lea.vmem %s44_s18, 1024  ;;  %p649_p6 = scmp.lt.s32.totalorder %s44_s18, %s44_s18 }
  0x2c   :  { %p645_p5 = scmp.ne.s32.totalorder %s44_s18, %s644_s14  ;;  %p650_p7 = scmp.lt.s32.totalorder %s644_s14, %s644_s14 }
  0x2e   :  { %p651_p8 = por %p650_p7, %p649_p6 }
  0x30   :  { %p652_p9 = pnand %p651_p8, %p645_p5 }
  0x32   :  { %655 = shalt.err (!%p652_p9)
}
  0x33   :  { %49 = dma.hbm_to_vmem [thread:$0]  %s867_s2, 1024, %s44_s18, [#allocation6], %s709_s11, %s709_s11, %s710_s12  }
  0x34   :  { %s713_s16 = smov [#allocation8]   ;;  %s656_s21 = scalar_lea.hbm %s868_s3, 1024 }
  0x35   :  { %s55_s17 = sshll.u32 %s713_s16, 4  ;;  %p657_p10 = scmp.ne.s32.totalorder %s868_s3, %s656_s21  ;;  %s56_s17 = int_to_ptr.vmem [resolvable:$true] %s55_s17 }
  0x36   :  { %p660_p11 = scmp.lt.u32.totalorder %s656_s21, %s868_s3 }
  0x38   :  { %p662_p12 = pnand %p660_p11, %p657_p10 }
  0x3a   :  { %665 = shalt.err (!%p662_p12)
}
  0x3b   :  { %s666_s1 = scalar_lea.vmem %s56_s17, 1024  ;;  %p671_p0 = scmp.lt.s32.totalorder %s56_s17, %s56_s17 }
  0x3c   :  { %p667_p13 = scmp.ne.s32.totalorder %s56_s17, %s666_s1  ;;  %p672_p1 = scmp.lt.s32.totalorder %s666_s1, %s666_s1 }
  0x3e   :  { %p673_p2 = por %p672_p1, %p671_p0 }
  0x40   :  { %p674_p3 = pnand %p673_p2, %p667_p13 }
  0x42   :  { %677 = shalt.err (!%p674_p3)
}
  0x43   :  { %61 = dma.hbm_to_vmem [thread:$0]  %s868_s3, 1024, %s56_s17, [#allocation9], %s709_s11, %s709_s11, %s710_s12  }
  0x44   :  { %700 = dma.done.wait [#allocation3], 64  }
  0x45   :  { %701 = vsyncadd [#allocation3], 4294967232 }
  0x46   :  { %702 = dma.done.wait [#allocation6], 2048  }
  0x47   :  { %703 = vsyncadd [#allocation6], 4294965248 }
  0x48   :  { %704 = dma.done.wait [#allocation9], 1024  }
  0x49   :  { %705 = vsyncadd [#allocation9], 4294966272  ;;  %v714_v0 = vmov 0.0   ;;  %vm715_vm0 = vmmov 0   ;;  %v566_v1 = vld [vmem:[#allocation5] sm:$0xff]   ;;  %v567_v2 = vld [vmem:[#allocation5 + $0x8] sm:$0xff]  }
  0x4a   :  { %497 = vmatprep.subr.bf16.mxu0 %v714_v0  ;;  %513 = vmatprep.mubr.msk.bf16.mxu0 %vm715_vm0, %v714_v0  ;;  %v568_v3 = vld [vmem:[#allocation5 + $0x10] sm:$0xff]   ;;  %v574_v4 = vld [vmem:[#allocation7] sm:$0xff]   ;;  %v569_v5 = vld [vmem:[#allocation5 + $0x18] sm:$0xff]   ;;  %s716_s28 = smov [#allocation10]  }
  0x4b   :  { %517 = vmatprep.subr.bf16.mxu1 %v714_v0  ;;  %533 = vmatprep.mubr.msk.bf16.mxu1 %vm715_vm0, %v714_v0  ;;  %v575_v6 = vld [vmem:[#allocation7 + $0x8] sm:$0xff]   ;;  %v570_v7 = vld [vmem:[#allocation5 + $0x20] sm:$0xff]   ;;  %v576_v8 = vld [vmem:[#allocation7 + $0x10] sm:$0xff]   ;;  %s432_s29 = sshll.u32 %s716_s28, 4  ;;  %s433_s29 = int_to_ptr.vmem [resolvable:$true] %s432_s29 }
  0x4c   :  { %498 = vmatpush3.bf16.msra.mxu0 %v566_v1  ;;  %518 = vmatpush3.bf16.msra.mxu1 %v574_v4  ;;  %v571_v9 = vld [vmem:[#allocation5 + $0x28] sm:$0xff]   ;;  %v577_v10 = vld [vmem:[#allocation7 + $0x18] sm:$0xff]   ;;  %v572_v11 = vld [vmem:[#allocation5 + $0x30] sm:$0xff]   ;;  %p683_p5 = scmp.lt.s32.totalorder %s433_s29, %s433_s29 }
  0x4d   :  { %499 = vmatprep.subr.bf16.mxu0 %v714_v0  ;;  %519 = vmatprep.subr.bf16.mxu1 %v714_v0  ;;  %v578_v12 = vld [vmem:[#allocation7 + $0x20] sm:$0xff]   ;;  %v573_v13 = vld [vmem:[#allocation5 + $0x38] sm:$0xff]   ;;  %v579_v14 = vld [vmem:[#allocation7 + $0x28] sm:$0xff]  }
  0x4e   :  { %v81_v15 = vld [vmem:[#allocation2] sm:$0xf]  ;;  %v580_v16 = vld [vmem:[#allocation7 + $0x30] sm:$0xff]   ;;  %v582_v18 = vld [vmem:[#allocation8] sm:$0xff]  }
  0x4f   :  { %v581_v17 = vld [vmem:[#allocation7 + $0x38] sm:$0xff]   ;;  %v583_v19 = vld [vmem:[#allocation8 + $0x8] sm:$0xff]   ;;  %v584_v20 = vld [vmem:[#allocation8 + $0x10] sm:$0xff]  }
  0x50   :  { %500 = vmatpush3.bf16.msra.mxu0 %v567_v2  ;;  %520 = vmatpush3.bf16.msra.mxu1 %v575_v6  ;;  %v585_v21 = vld [vmem:[#allocation8 + $0x18] sm:$0xff]   ;;  %v586_v22 = vld [vmem:[#allocation8 + $0x20] sm:$0xff]   ;;  %v587_v23 = vld [vmem:[#allocation8 + $0x28] sm:$0xff]  }
  0x51   :  { %501 = vmatprep.subr.bf16.mxu0 %v714_v0  ;;  %521 = vmatprep.subr.bf16.mxu1 %v714_v0  ;;  %v451_v25 = vld [vmem:[%s869_s4] ss:$0 sm:$0xff]  ;;  %v588_v33 = vld [vmem:[#allocation8 + $0x30] sm:$0xff]  }
  0x52   :  { %v589_v34 = vld [vmem:[#allocation8 + $0x38] sm:$0xff]  }
  0x53   :  { %v460_v36 = vld [vmem:[%s870_s5] ss:$0 sm:$0xff]  ;;  %s678_s5 = scalar_lea.vmem %s433_s29, 128 }
  0x54   :  { %502 = vmatpush3.bf16.msra.mxu0 %v568_v3  ;;  %522 = vmatpush3.bf16.msra.mxu1 %v576_v8  ;;  %v469_v45 = vld [vmem:[%s871_s6] ss:$0 sm:$0xff]  ;;  %p679_p4 = scmp.ne.s32.totalorder %s433_s29, %s678_s5  ;;  %p684_p6 = scmp.lt.s32.totalorder %s678_s5, %s678_s5 }
  0x55   :  { %503 = vmatprep.subr.bf16.mxu0 %v714_v0  ;;  %523 = vmatprep.subr.bf16.mxu1 %v714_v0 }
  0x56   :  { %p685_p7 = por %p684_p6, %p683_p5 }
  0x58   :  { %504 = vmatpush3.bf16.msra.mxu0 %v569_v5  ;;  %524 = vmatpush3.bf16.msra.mxu1 %v577_v10  ;;  %p686_p8 = pnand %p685_p7, %p679_p4 }
  0x59   :  { %505 = vmatprep.subr.bf16.mxu0 %v714_v0  ;;  %525 = vmatprep.subr.bf16.mxu1 %v714_v0 }
  0x5c   :  { %506 = vmatpush3.bf16.msra.mxu0 %v570_v7  ;;  %526 = vmatpush3.bf16.msra.mxu1 %v578_v12 }
  0x5d   :  { %507 = vmatprep.subr.bf16.mxu0 %v714_v0  ;;  %527 = vmatprep.subr.bf16.mxu1 %v714_v0 }
  0x60   :  { %508 = vmatpush3.bf16.msra.mxu0 %v571_v9  ;;  %528 = vmatpush3.bf16.msra.mxu1 %v579_v14 }
  0x61   :  { %509 = vmatprep.subr.bf16.mxu0 %v714_v0  ;;  %529 = vmatprep.subr.bf16.mxu1 %v714_v0 }
  0x64   :  { %510 = vmatpush3.bf16.msra.mxu0 %v572_v11  ;;  %530 = vmatpush3.bf16.msra.mxu1 %v580_v16 }
  0x65   :  { %511 = vmatprep.subr.bf16.mxu0 %v714_v0  ;;  %531 = vmatprep.subr.bf16.mxu1 %v714_v0 }
  0x68   :  { %512 = vmatpush3.bf16.msra.mxu0 %v573_v13  ;;  %532 = vmatpush3.bf16.msra.mxu1 %v581_v17 }
  0x69   :  { %537 = vmatprep.subr.bf16.mxu0 %v714_v0 }
  0x6b   :  { %514 = vmatmul.mubr.bf16.vlgmr.msra.gmra.mrb[0].mxu0 %v81_v15 }
  0x6c   :  { %553 = vmatprep.mubr.msk.bf16.mxu0 %vm715_vm0, %v714_v0  ;;  %538 = vmatpush3.bf16.msra.mxu0 %v582_v18 }
  0x6d   :  { %539 = vmatprep.subr.bf16.mxu0 %v714_v0 }
  0x70   :  { %540 = vmatpush3.bf16.msra.mxu0 %v583_v19 }
  0x71   :  { %541 = vmatprep.subr.bf16.mxu0 %v714_v0 }
  0x74   :  { %542 = vmatpush3.bf16.msra.mxu0 %v584_v20 }
  0x75   :  { %543 = vmatprep.subr.bf16.mxu0 %v714_v0 }
  0x78   :  { %544 = vmatpush3.bf16.msra.mxu0 %v585_v21 }
  0x79   :  { %545 = vmatprep.subr.bf16.mxu0 %v714_v0 }
  0x7c   :  { %546 = vmatpush3.bf16.msra.mxu0 %v586_v22 }
  0x7d   :  { %547 = vmatprep.subr.bf16.mxu0 %v714_v0 }
  0x80   :  { %548 = vmatpush3.bf16.msra.mxu0 %v587_v23 }
  0x81   :  { %549 = vmatprep.subr.bf16.mxu0 %v714_v0 }
  0x84   :  { %550 = vmatpush3.bf16.msra.mxu0 %v588_v33 }
  0x85   :  { %551 = vmatprep.subr.bf16.mxu0 %v714_v0 }
  0x88   :  { %552 = vmatpush3.bf16.msra.mxu0 %v589_v34 }
 0x13e   :  { %v180_v24 = vpop.f32.mrb[0].mxu0 }
 0x13f   :  { %v186_v26 = vmul.f32 0.17677669, %v180_v24  ;;  %v515_v27 = vpop.f32.mrb[1].mxu0 }
 0x140   :  { %v183_v28 = vpop.f32.mrb[2].mxu0 }
 0x141   :  { %v194_v29 = vadd.f32 %v451_v25, %v186_v26  ;;  %v516_v30 = vpop.f32.mrb[3].mxu0 }
 0x143   :  { %v195_v31 = vmax.f32 %v194_v29, 0.0 }
 0x145   :  { %v196_v32 = vpack.c.bf16 %v195_v31, %v195_v31 }
 0x147   :  { %534 = vmatmul.mubr.bf16.vlgmr.msra.gmra.mrb[0].mxu1 %v196_v32 }
 0x21a   :  { %v295_v35 = vpop.f32.mrb[0].mxu1 }
 0x21b   :  { %v301_v37 = vmul.f32 0.17677669, %v295_v35  ;;  %v535_v38 = vpop.f32.mrb[1].mxu1 }
 0x21c   :  { %v298_v39 = vpop.f32.mrb[2].mxu1 }
 0x21d   :  { %v309_v40 = vadd.f32 %v460_v36, %v301_v37  ;;  %v536_v41 = vpop.f32.mrb[3].mxu1 }
 0x21f   :  { %v310_v42 = vmax.f32 %v309_v40, 0.0 }
 0x221   :  { %v311_v43 = vpack.c.bf16 %v310_v42, %v310_v42 }
 0x223   :  { %554 = vmatmul.mubr.bf16.vlgmr.msra.gmra.mrb[4].mxu0 %v311_v43 }
 0x2f6   :  { %v410_v44 = vpop.f32.mrb[4].mxu0 }
 0x2f7   :  { %v416_v46 = vmul.f32 0.125, %v410_v44  ;;  %v555_v47 = vpop.f32.mrb[5].mxu0 }
 0x2f8   :  { %v413_v48 = vpop.f32.mrb[6].mxu0 }
 0x2f9   :  { %v424_v49 = vadd.f32 %v469_v45, %v416_v46  ;;  %v556_v50 = vpop.f32.mrb[7].mxu0 }
 0x2fb   :  { %425 = vst [vmem:[#allocation10] sm:$0xff] %v424_v49 }
 0x2fc   :  { %689 = shalt.err (!%p686_p8)
}
 0x2fd   :  { %s690_s6 = scalar_lea.hbm %s872_s7, 128 }
 0x2fe   :  { %p691_p9 = scmp.ne.s32.totalorder %s872_s7, %s690_s6  ;;  %p694_p10 = scmp.lt.u32.totalorder %s690_s6, %s872_s7 }
 0x300   :  { %p696_p11 = pnand %p694_p10, %p691_p9 }
 0x302   :  { %699 = shalt.err (!%p696_p11)
}
 0x303   :  { %435 = dma.vmem_to_hbm [thread:$0]  %s433_s29, 128, %s872_s7, [#allocation4]  }
 0x304   :  { %706 = dma.done.wait [#allocation4], 128  }
 0x305   :  { %707 = vsyncadd [#allocation4], 4294967168 }
 0x306   :  { %439 = vsyncpa [#allocation3], 1 }
 0x307   :  { %440 = vsyncpa [#allocation6], 1 }
 0x308   :  { %441 = vsyncpa [#allocation9], 1 }
 0x309   :  { %442 = vsyncpa [#allocation4], 1 }

</bundles_post_ra>
